<compile_context>
chip_gen: v7x
topology: tpu7x:2x2x1
jax: 0.10.0
libtpu: 0.0.40
codegen_flags: <defaults>
</compile_context>

<pallas_src>
import functools

import jax
import jax.numpy as jnp
from jax.experimental import pallas as pl
from jax.experimental.pallas import tpu as pltpu


# ---------------------------------------------------------------------------
# Stage 1: support = x @ W   (f32 MXU accumulate, stored in bf16)
# ---------------------------------------------------------------------------
def gcn_support_kernel(x_ref, w_ref, s_ref):
    # x_ref: (1, TS, Fin), w_ref: (Fin, Fout), s_ref: (1, TS, Fout)
    s_ref[0] = jnp.dot(
        x_ref[0], w_ref[...], preferred_element_type=jnp.float32
    ).astype(s_ref.dtype)


# ---------------------------------------------------------------------------
# Stage 2: out = adj @ support (+ bias)   (bf16 operands, f32 accumulator)
# ---------------------------------------------------------------------------
def gcn_agg_kernel(adj_ref, s_ref, o_ref, acc_ref):
    # adj_ref: (1, TN, TK), s_ref: (1, TK, Fout), o_ref: (1, TN, Fout)
    k = pl.program_id(2)

    @pl.when(k == 0)
    def _():
        acc_ref[...] = jnp.zeros_like(acc_ref)

    acc_ref[...] += jnp.dot(
        adj_ref[0], s_ref[0], preferred_element_type=jnp.float32)

    @pl.when(k == pl.num_programs(2) - 1)
    def _():
        o_ref[0] = acc_ref[...].astype(o_ref.dtype)


def gcn_agg_bias_kernel(adj_ref, s_ref, b_ref, o_ref, acc_ref):
    # Same as above, bias (1, Fout) added once at finalize.
    k = pl.program_id(2)

    @pl.when(k == 0)
    def _():
        acc_ref[...] = jnp.zeros_like(acc_ref)

    acc_ref[...] += jnp.dot(
        adj_ref[0], s_ref[0], preferred_element_type=jnp.float32)

    @pl.when(k == pl.num_programs(2) - 1)
    def _():
        o_ref[0] = (acc_ref[...] + b_ref[...]).astype(o_ref.dtype)


# ---------------------------------------------------------------------------
# Tiling helpers
# ---------------------------------------------------------------------------
_VMEM_LIMIT = 48 * 1024 * 1024        # safe on v7x (64 MiB physical), raise vs defaults
_VMEM_BUFFER_BUDGET = 40 * 1024 * 1024


def _row_tile(n, max_tile):
    # Full dim if it fits, else a 128-aligned tile (MXU M dim is 128/256).
    if n <= max_tile:
        return n
    return max(128, (max_tile // 128) * 128)


def _k_tile(n, max_tile):
    # Contraction tile: must be 128-aligned (adj last dim) AND divide N exactly
    # (a padded K tail would accumulate garbage into valid rows).
    if n <= max_tile:
        return n
    t = (max_tile // 128) * 128
    while t >= 128:
        if n % t == 0:
            return t
        t -= 128
    # TODO(synk): no 128-aligned divisor of N -> fall back to full contraction
    # (correct, but VMEM grows with N; mask the K tail to lift this restriction).
    return n


# ---------------------------------------------------------------------------
# Wrapper
# ---------------------------------------------------------------------------
def graph_convolution(x, adj, weight, bias=None, *,
                      max_row_tile=256, max_k_tile=1024,
                      adj_compute_dtype=jnp.bfloat16):
    """x: (B, N, Fin), adj: (B, N, N), weight: (Fin, Fout), bias: (1,1,Fout) or None."""
    B, N, Fin = x.shape
    Fout = weight.shape[1]
    assert adj.shape == (B, N, N), "expected batched adjacency (B, N, N)"
    assert weight.shape == (Fin, Fout)

    out_dtype = x.dtype
    a_isz = jnp.dtype(adj_compute_dtype).itemsize
    o_isz = jnp.dtype(out_dtype).itemsize

    # ---------------- Stage 1: support = x @ W (stored bf16) ----------------
    TS = _row_tile(N, max_row_tile)
    support = pl.pallas_call(
        gcn_support_kernel,
        out_shape=jax.ShapeDtypeStruct((B, N, Fout), adj_compute_dtype),
        grid_spec=pltpu.PrefetchScalarGridSpec(
            num_scalar_prefetch=0,
            grid=(B, pl.cdiv(N, TS)),
            in_specs=[
                pl.BlockSpec((1, TS, Fin), lambda b, r: (b, r, 0)),
                pl.BlockSpec((Fin, Fout), lambda b, r: (0, 0)),
            ],
            out_specs=pl.BlockSpec((1, TS, Fout), lambda b, r: (b, r, 0)),
        ),
        compiler_params=pltpu.CompilerParams(
            dimension_semantics=("parallel", "parallel"),
            vmem_limit_bytes=_VMEM_LIMIT,
        ),
        cost_estimate=pl.CostEstimate(
            flops=2 * B * N * Fin * Fout,
            transcendentals=0,
            bytes_accessed=(B * N * Fin * x.dtype.itemsize
                            + Fin * Fout * weight.dtype.itemsize
                            + B * N * Fout * a_isz),
        ),
    )(x, weight)

    # ---------------- Stage 2: out = adj @ support (+ bias) -----------------
    adj_c = adj if adj.dtype == adj_compute_dtype else adj.astype(adj_compute_dtype)

    TN = _row_tile(N, max_row_tile)
    TK = _k_tile(N, max_k_tile)

    def _vmem_est(tn, tk):
        return (2 * tn * tk * a_isz        # adj block, double-buffered
                + 2 * tk * Fout * a_isz    # support block, double-buffered
                + 2 * tn * Fout * o_isz    # output block, double-buffered
                + tn * Fout * 4            # f32 accumulator scratch
                + Fout * 4)                # bias
    while TN > 128 and _vmem_est(TN, TK) > _VMEM_BUFFER_BUDGET:
        TN = max(128, TN // 2)

    grid = (B, pl.cdiv(N, TN), pl.cdiv(N, TK))  # reduction axis innermost

    adj_spec = pl.BlockSpec((1, TN, TK), lambda b, r, k: (b, r, k))
    sup_spec = pl.BlockSpec((1, TK, Fout), lambda b, r, k: (b, k, 0))
    out_spec = pl.BlockSpec((1, TN, Fout), lambda b, r, k: (b, r, 0))

    has_bias = bias is not None
    if has_bias:
        b2 = jnp.reshape(bias, (1, Fout)).astype(jnp.float32)
        kernel = gcn_agg_bias_kernel
        in_specs = [adj_spec, sup_spec, pl.BlockSpec((1, Fout), lambda b, r, k: (0, 0))]
        args = (adj_c, support, b2)
    else:
        kernel = gcn_agg_kernel
        in_specs = [adj_spec, sup_spec]
        args = (adj_c, support)

    cost = pl.CostEstimate(
        flops=2 * B * N * N * Fout,
        transcendentals=0,
        bytes_accessed=(B * N * N * a_isz
                        + B * N * Fout * a_isz
                        + B * N * Fout * o_isz
                        + (Fout * 4 if has_bias else 0)),
    )

    return pl.pallas_call(
        kernel,
        out_shape=jax.ShapeDtypeStruct((B, N, Fout), out_dtype),
        grid_spec=pltpu.PrefetchScalarGridSpec(
            num_scalar_prefetch=0,
            grid=grid,
            in_specs=in_specs,
            out_specs=out_spec,
            scratch_shapes=[pltpu.VMEM((TN, Fout), jnp.float32)],
        ),
        compiler_params=pltpu.CompilerParams(
            dimension_semantics=("parallel", "parallel", "arbitrary"),
            vmem_limit_bytes=_VMEM_LIMIT,
        ),
        cost_estimate=cost,
    )(*args)


# ---------------------------------------------------------------------------
# Pure-JAX reference (f32)
# ---------------------------------------------------------------------------
def reference_gcn(x, adj, weight, bias=None):
    support = x @ weight                                  # (B, N, Fout)
    out = jnp.einsum("bnm,bmf->bnf", adj, support)        # (B, N, Fout)
    if bias is not None:
        out = out + bias.reshape(1, 1, -1)
    return out


if __name__ == "__main__":
    # GraphConvolution(in_features=32, out_features=128) on a 2-graph batch of 16 nodes.
    # Fout = 128 keeps the output last dim lane-dense (multiple of 128).
    B, N, Fin, Fout = 2, 16, 32, 128

    key = jax.random.PRNGKey(0)
    kx, ka, kw, kb = jax.random.split(key, 4)
    x = jax.random.normal(kx, (B, N, Fin), dtype=jnp.float32)
    adj = jax.random.uniform(ka, (B, N, N), dtype=jnp.float32)

    stdv = 1.0 / (Fout ** 0.5)                            # matches reset_parameters()
    weight = jax.random.uniform(kw, (Fin, Fout), dtype=jnp.float32,
                                minval=-stdv, maxval=stdv)
    bias = jax.random.uniform(kb, (1, 1, Fout), dtype=jnp.float32,
                              minval=-stdv, maxval=stdv)

    # Default module config: bias=False
    out_nb = jax.block_until_ready(graph_convolution(x, adj, weight, bias=None))
    ref_nb = reference_gcn(x, adj, weight, bias=None)
    assert out_nb.shape == (B, N, Fout)
    # bf16 adj/support stream (f32 accumulation) -> compare with a loose tolerance.
    assert jnp.allclose(out_nb, ref_nb, atol=3e-2, rtol=3e-2), "mismatch (bias=False)"

    # bias=True path
    out_b = jax.block_until_ready(graph_convolution(x, adj, weight, bias=bias))
    ref_b = reference_gcn(x, adj, weight, bias=bias)
    assert jnp.allclose(out_b, ref_b, atol=3e-2, rtol=3e-2), "mismatch (bias=True)"

    print("KERNEL_OK")
</pallas_src>

<mosaic_0001>
module attributes {stable_mosaic.version = 11 : i64} {
  func.func @gcn_support_kernel(%arg0: i32, %arg1: i32, %arg2: memref<1x16x32xf32, #tpu.memory_space<vmem>>, %arg3: memref<32x128xf32, #tpu.memory_space<vmem>>, %arg4: memref<1x16x128xbf16, #tpu.memory_space<vmem>>) attributes {dimension_semantics = [#tpu.dimension_semantics<parallel>, #tpu.dimension_semantics<parallel>], iteration_bounds = array<i64: 2, 1>, scalar_prefetch = 0 : i64, scratch_operands = 0 : i64, tpu.core_type = #tpu.core_type<tc>, window_params = [{transform_indices = @transform_0, window_bounds = array<i64: 1, 16, 32>}, {pipeline_mode = #tpu.pipeline_mode<synchronous>, transform_indices = @transform_1, window_bounds = array<i64: 32, 128>}, {transform_indices = @transform_2, window_bounds = array<i64: 1, 16, 128>}]} {
    %c0 = arith.constant 0 : index
    %c0_0 = arith.constant 0 : index
    %c0_1 = arith.constant 0 : index
    %0 = vector.load %arg2[%c0, %c0_0, %c0_1] : memref<1x16x32xf32, #tpu.memory_space<vmem>>, vector<1x16x32xf32>
    %1 = vector.shape_cast %0 : vector<1x16x32xf32> to vector<16x32xf32>
    %c0_2 = arith.constant 0 : index
    %c0_3 = arith.constant 0 : index
    %2 = vector.load %arg3[%c0_2, %c0_3] : memref<32x128xf32, #tpu.memory_space<vmem>>, vector<32x128xf32>
    %cst = arith.constant dense<0.000000e+00> : vector<16x128xf32>
    %3 = tpu.matmul %1, %2, %cst {dimension_numbers = #tpu.dot_dimension_numbers<[1], [0], [0], [1], [0, 0, 1, 1], [], []>} : vector<16x32xf32>, vector<32x128xf32>, vector<16x128xf32> -> vector<16x128xf32>
    %4 = arith.truncf %3 : vector<16x128xf32> to vector<16x128xbf16>
    %c0_4 = arith.constant 0 : index
    %c0_5 = arith.constant 0 : index
    %c0_6 = arith.constant 0 : index
    %5 = vector.load %arg4[%c0_4, %c0_5, %c0_6] : memref<1x16x128xbf16, #tpu.memory_space<vmem>>, vector<1x16x128xbf16>
    %6 = vector.shape_cast %5 : vector<1x16x128xbf16> to vector<16x128xbf16>
    %7 = vector.shape_cast %4 : vector<16x128xbf16> to vector<1x16x128xbf16>
    tpu.vector_store %arg4[%c0_4, %c0_5, %c0_6], %7 {strides = array<i32>} : memref<1x16x128xbf16, #tpu.memory_space<vmem>>, vector<1x16x128xbf16>,
    return
  }
  func.func @transform_0(%arg0: i32, %arg1: i32) -> (i32, i32, i32) {
    %c0_i32 = arith.constant 0 : i32
    %c0_i32_0 = arith.constant 0 : i32
    return %arg0, %arg1, %c0_i32 : i32, i32, i32
  }
  func.func @transform_1(%arg0: i32, %arg1: i32) -> (i32, i32) {
    %c0_i32 = arith.constant 0 : i32
    %c0_i32_0 = arith.constant 0 : i32
    %c0_i32_1 = arith.constant 0 : i32
    return %c0_i32, %c0_i32_0 : i32, i32
  }
  func.func @transform_2(%arg0: i32, %arg1: i32) -> (i32, i32, i32) {
    %c0_i32 = arith.constant 0 : i32
    %c0_i32_0 = arith.constant 0 : i32
    return %arg0, %arg1, %c0_i32 : i32, i32, i32
  }
}

</mosaic_0001>

<bundles_post_ra>
// kernel: tpu_custom_call.1
= control target key start
LH: loop header
LB: loop body
LE: loop exit
PB: predicated region body
PF: predicated region fallthrough
CT: control target
= control target key end

     0   :  { %7 = vsyncpa [#allocation3], 0  ;;  %s934_s0 = inlined_call_operand.hbm [shape: f32[2,16,32], index: 0, kind: input, shape index: {}]   ;;  %s935_s1 = inlined_call_operand.hbm [shape: f32[32,128], index: 1, kind: input, shape index: {}]   ;;  %s936_s2 = inlined_call_operand.hbm [shape: bf16[2,16,128], index: 2, kind: output, shape index: {}]  }
   0x1   :  { %9 = vsyncpa [#allocation3 + $0x1], 0 }
   0x2   :  { %10 = vsyncpa [#allocation6], 0 }
   0x3   :  { %11 = vsyncpa [#allocation4], 0 }
   0x4   :  { %13 = vsyncpa [#allocation4 + $0x1], 0  ;;  %s708_s9 = smov 0   ;;  %s710_s10 = smov 0  }
   0x5   :  { %s712_s11 = smov 0   ;;  %s714_s12 = smov 0  }
   0x6   :  { %s716_s13 = smov 0   ;;  %s718_s14 = smov 0  }
   0x7 LB: > { %s408_s15 = sadd.s32 4294967295, %s684_s14   ;;  %s409_s16 = sadd.s32 4294967294, %s684_s14   ;;  %s684_s14 = sphi %s718_s14, %s19_s14   ;;  %s680_s13 = sphi %s716_s13, %s960_s13   ;;  %s676_s12 = sphi %s714_s12, %s959_s12   ;;  %s672_s11 = sphi %s712_s11, %s958_s11   ;;  %s668_s10 = sphi %s710_s10, %s957_s10   ;;  %s664_s9 = sphi %s708_s9, %s956_s9  }
   0x8   : > { %p53_p0 = scmp.ne.s32.totalorder %s668_s10, %s664_s9  ;;  %p742_p1 = scmp.eq.s32.totalorder %s408_s15, 0 }
   0x9   : > { %p746_p2 = scmp.eq.s32.totalorder %s408_s15, 1  ;;  %p106_p3 = scmp.eq.s32.totalorder %s409_s16, 1 }
   0xa   : > { %s941_s17 = scalar_select %p742_p1, 1, 0 }
   0xb   : > { %s942_s18 = scalar_select %p746_p2, 1, 0 }
   0xc   : > { %p752_p4 = por %p742_p1, %p53_p0  ;;  %p410_p5 = scmp.ge.s32.totalorder %s684_s14, 1 }
   0xd   : > { %p757_p6 = por %p106_p3, %p53_p0  ;;  %p113_p7 = scmp.lt.s32.totalorder %s684_s14, 3 }
   0xe   : > { %s943_s19 = scalar_select %p752_p4, 1, 0 }
   0xf   : > { %s944_s20 = scalar_select %p757_p6, 1, 0 }
  0x10   : > { %p762_p8 = pnand %p410_p5, %p113_p7  ;;  %s686_s22 = smov [#allocation5]  }
  0x11   : > { %s125_s23 = sshll.u32 %s686_s22, 4  ;;  %s31_s25 = sadd.s32 1, %s680_s13  ;;  %s126_s23 = int_to_ptr.vmem [resolvable:$true] %s125_s23 }
  0x12   : > { %s945_s21 = scalar_select %p762_p8, 1, 0 }
  0x13   : > { %p471_p9 = pneg %p762_p8  ;;  %s540_s28 = scalar_lea.hbm %s935_s1, 512 }
  0x14   : > { %p541_p12 = scmp.ne.s32.totalorder %s935_s1, %s540_s28  ;;  %p547_p5 = scmp.lt.u32.totalorder %s540_s28, %s935_s1 }
  0x15   : > { %p771_p11 = pnand %p471_p9, %p742_p1 }
  0x17   : > { %p542_p13 = pneg %p771_p11 }
  0x19   : > { %p543_p0 = pnand %p542_p13, %p541_p12 }
  0x1b   : > { %p544_p3 = pneg %p543_p0 }
  0x1d   : > { %p549_p7 = pnand %p547_p5, %p544_p3 }
  0x1f   : > { %552 = shalt.err (!%p549_p7)
}
  0x20   : > { %s553_s5 = scalar_lea.vmem %s126_s23, 512  ;;  %p561_p1 = scmp.lt.s32.totalorder %s126_s23, %s126_s23 }
  0x21   : > { %p554_p9 = scmp.ne.s32.totalorder %s126_s23, %s553_s5  ;;  %p562_p4 = scmp.lt.s32.totalorder %s553_s5, %s553_s5 }
  0x23   : > { %p556_p10 = pnand %p554_p9, %p542_p13  ;;  %p563_p8 = por %p562_p4, %p561_p1 }
  0x25   : > { %p557_p6 = pneg %p556_p10 }
  0x27   : > { %p564_p2 = pnand %p563_p8, %p557_p6 }
  0x29   : > { %567 = shalt.err (!%p564_p2)
}
  0x2a   : > { %s687_s6 = smov 128   ;;  %s688_s7 = smov 8  }
  0x2b   : > { %474 = dma.hbm_to_vmem [thread:$0]  (!%p771_p11), %s935_s1, 512, %s126_s23, [#allocation6], %s687_s6, %s687_s6, %s688_s7  }
  0x2c   : > { %p33_p1 = scmp.ge.s32.totalorder %s31_s25, 2  ;;  %s40_s16 = sadd.s32 1, %s672_s11 }
  0x2d   : > { %p47_p2 = scmp.ne.s32.totalorder %s672_s11, %s668_s10  ;;  %p48_p4 = scmp.eq.s32.totalorder %s684_s14, 0 }
  0x2e   : > { %s962_s25 = smov (%p33_p1, %s31_s25), 0  ;;  %p948_p8 = scmp.ne.s32.totalorder %s942_s18, 0 }
  0x2f   : > { %p801_p6 = por %p48_p4, %p47_p2  ;;  %s35_s26 = ssub.s32 %s680_s13, %s962_s25 }
  0x30   : > { %p807_p10 = por %p948_p8, %p47_p2  ;;  %p484_p12 = scmp.lt.s32.totalorder %s684_s14, 2 }
  0x31   : > { %p38_p11 = scmp.eq.s32.totalorder %s35_s26, 0  ;;  %s139_s23 = sand.u32 1, %s672_s11  }
  0x32   : > { %s413_s27 = sshll.u32 %s139_s23, 4  ;;  %s429_s29 = sshll.u32 %s680_s13, 8 }
  0x33   : > { %s816_s28 = scalar_select %p38_p11, %s672_s11, %s40_s16  }
  0x34   : > { %s822_s4 = scalar_lea.hbm %s934_s0, %s429_s29  ;;  %s143_s18 = scalar_lea.vmem [#allocation2], %s413_s27 }
  0x35   : > { %s152_s5 = sshll.u32 %s143_s18, 4  ;;  %p828_p13 = pnand %p484_p12, %p801_p6  ;;  %s824_s5 = int_to_ptr.vmem [resolvable:$true] %s152_s5 }
  0x36   : > { %s832_s15 = scalar_lea.sflag [#allocation3], %s139_s23  ;;  %s568_s16 = scalar_lea.hbm %s822_s4, 256 }
  0x37   : > { %p569_p0 = scmp.ne.s32.totalorder %s822_s4, %s568_s16  ;;  %p570_p3 = pneg %p828_p13 }
  0x38   : > { %s573_s22 = scalar_lea.hbm %s934_s0, 512  ;;  %p574_p9 = scmp.lt.u32.totalorder %s822_s4, %s934_s0 }
  0x39   : > { %p571_p5 = pnand %p570_p3, %p569_p0  ;;  %p575_p1 = scmp.lt.u32.totalorder %s573_s22, %s568_s16 }
  0x3a   : > { %p577_p4 = scmp.lt.u32.totalorder %s568_s16, %s822_s4 }
  0x3b   : > { %p572_p7 = pneg %p571_p5  ;;  %p576_p2 = por %p575_p1, %p574_p9 }
  0x3d   : > { %p578_p6 = por %p577_p4, %p576_p2 }
  0x3f   : > { %p579_p8 = pnand %p578_p6, %p572_p7 }
  0x41   : > { %582 = shalt.err (!%p579_p8)
}
  0x42   : > { %s583_s23 = scalar_lea.vmem %s824_s5, 256  ;;  %s689_s3 = smov [#allocation2]  }
  0x43   : > { %p584_p12 = scmp.ne.s32.totalorder %s824_s5, %s583_s23  ;;  %s588_s18 = sshll.u32 %s689_s3, 4  ;;  %s589_s18 = int_to_ptr.vmem [resolvable:$false] %s588_s18 }
  0x44   : > { %s590_s26 = scalar_lea.vmem %s589_s18, 512  ;;  %p591_p5 = scmp.lt.s32.totalorder %s824_s5, %s589_s18 }
  0x45   : > { %p586_p11 = pnand %p584_p12, %p570_p3  ;;  %p592_p9 = scmp.lt.s32.totalorder %s590_s26, %s583_s23 }
  0x47   : > { %p587_p0 = pneg %p586_p11  ;;  %p593_p1 = por %p592_p9, %p591_p5 }
  0x49   : > { %p594_p2 = pnand %p593_p1, %p587_p0 }
  0x4b   : > { %597 = shalt.err (!%p594_p2)
}
  0x4c   : > { %478 = dma.hbm_to_vmem [thread:$0]  (!%p828_p13), %s822_s4, 256, %s824_s5, %s832_s15, %s687_s6, %s687_s6, %s688_s7  }
  0x4d   : > { %p951_p3 = scmp.ne.s32.totalorder %s945_s21, 0 }
  0x4e   : > { %s866_s16 = sand.u32 (!%p951_p3), 1, %s668_s10   ;;  %p952_p7 = scmp.ne.s32.totalorder (!%p951_p3), %s943_s19, 0 }
  0x4f   : > { %164 = sbr.rel (%p951_p3) target bundleno = 331 (0x14b), region = 28  ;;  %s417_s27 = sshll.u32 (!%p951_p3), %s866_s16, 4 }
  0x50   : > { %s167_s22 = scalar_lea.sflag (!%p951_p3), [#allocation3], %s866_s16  ;;  %s170_s29 = scalar_lea.vmem (!%p951_p3), [#allocation2], %s417_s27 }
  0x56   : > { %651 = dma.done.wait (%p952_p7), %s167_s22, 256  }
  0x57   : > { %653 = vsyncadd (%p952_p7), %s167_s22, 4294967040  ;;  %p953_p4 = scmp.ne.s32.totalorder %s941_s17, 0 }
  0x59   : > { %655 = dma.done.wait (%p953_p4), [#allocation6], 512  }
  0x5a   : > { %657 = vsyncadd (%p953_p4), [#allocation6], 4294966784  ;;  %vm203_vm0 = vcmask 261120   ;;  %v199_v0 = vld [vmem:[#allocation5] sm:$0xff]  ;;  %v200_v1 = vld [vmem:[#allocation5 + $0x8] sm:$0xff]  ;;  %s419_s17 = sshll.u32 %s866_s16, 3 }
  0x5b   : > { %v201_v2 = vld [vmem:[#allocation5 + $0x10] sm:$0xff]  ;;  %v455_v3 = vpack.c.bf16 %v200_v1, %v199_v0  ;;  %v202_v4 = vld [vmem:[#allocation5 + $0x18] sm:$0xff]  ;;  %s194_s19 = scalar_lea.vmem [#allocation7], %s419_s17  ;;  %s432_s6 = sshll.u32 %s676_s12, 7 }
  0x5c   : > { %v197_v5 = vld [vmem:[%s170_s29] sm:$0xff]  ;;  %v459_v6 = vpack.c.bf16 %v202_v4, %v201_v2  ;;  %v198_v7 = vld [vmem:[%s170_s29 + $0x8] sm:$0xff]  ;;  %s311_s21 = sshll.u32 %s194_s19, 4  ;;  %s885_s5 = scalar_lea.hbm %s936_s2, %s432_s6  ;;  %s880_s21 = int_to_ptr.vmem [resolvable:$true] %s311_s21 }
  0x5d   : > { %452 = vmatprep.mubr.msk.f32.mxu0 %vm203_vm0, %v197_v5  ;;  %456 = vmatprep.subr.bf16.mxu0 %v455_v3  ;;  %s296_s8 = scalar_lea.sflag [#allocation4], %s866_s16  ;;  %s598_s15 = scalar_lea.vmem %s880_s21, 128 }
  0x5e   : > { %458 = vmatpush3.bf16.msra.mxu0 %v455_v3  ;;  %p599_p13 = scmp.ne.s32.totalorder %s880_s21, %s598_s15  ;;  %s690_s12 = smov [#allocation7]  }
  0x5f   : > { %460 = vmatprep.subr.bf16.mxu0 %v459_v6  ;;  %s602_s30 = sshll.u32 %s690_s12, 4  ;;  %s603_s30 = int_to_ptr.vmem [resolvable:$false] %s602_s30 }
  0x60   : > { %p600_p6 = pnand %p599_p13, %p807_p10  ;;  %s604_s23 = scalar_lea.vmem %s603_s30, 256 }
  0x61   : > { %p605_p12 = scmp.lt.s32.totalorder %s880_s21, %s603_s30  ;;  %p606_p11 = scmp.lt.s32.totalorder %s604_s23, %s598_s15 }
  0x62   : > { %462 = vmatpush3.bf16.msra.mxu0 %v459_v6  ;;  %p601_p8 = pneg %p600_p6 }
  0x63   : > { %p607_p0 = por %p606_p11, %p605_p12 }
  0x65   : > { %453 = vmatmul.mubr.msk.f32.vlgmr.msra.gmra.mrb[0].mxu0 %vm203_vm0, %v198_v7  ;;  %p608_p5 = pnand %p607_p0, %p601_p8 }
 0x138   : > { %v454_v8 = vpop.f32.mrb[0].mxu0 }
 0x139   : > { %v276_v9 = vpop.f32.mrb[1].mxu0 }
 0x13a   : > { %v436_v10 = vpack.c.bf16 %v454_v8, %v276_v9 }
 0x13c   : > { %437 = vst [vmem:[%s194_s19] sm:$0xff] %v436_v10  }
 0x13d   : > { %611 = shalt.err (!%p608_p5)
}
 0x13e   : > { %s612_s3 = scalar_lea.hbm %s885_s5, 128  ;;  %s616_s27 = scalar_lea.hbm %s936_s2, 256 }
 0x13f   : > { %p613_p9 = scmp.ne.s32.totalorder %s885_s5, %s612_s3  ;;  %p617_p3 = scmp.lt.u32.totalorder %s885_s5, %s936_s2 }
 0x140   : > { %p618_p7 = scmp.lt.u32.totalorder %s616_s27, %s612_s3  ;;  %p620_p13 = scmp.lt.u32.totalorder %s612_s3, %s885_s5 }
 0x141   : > { %p614_p1 = pnand %p613_p9, %p807_p10 }
 0x142   : > { %p619_p4 = por %p618_p7, %p617_p3 }
 0x143   : > { %p615_p2 = pneg %p614_p1 }
 0x144   : > { %p621_p6 = por %p620_p13, %p619_p4 }
 0x146   : > { %p622_p8 = pnand %p621_p6, %p615_p2 }
 0x148   : > { %625 = shalt.err (!%p622_p8)
}
 0x149   : > { %s691_s17 = smov 64   ;;  %s692_s19 = smov 4  }
 0x14a   : > { %469 = dma.vmem_to_hbm [thread:$0]  (%p807_p10), %s880_s21, 128, %s885_s5, %s296_s8, %s691_s17, %s691_s17, %s692_s19  }
 0x14b PF: > { %s326_s6 = sand.u32 1, %s664_s9   ;;  %p954_p12 = scmp.ne.s32.totalorder %s944_s20, 0 }
 0x14c   : > { %p955_p11 = scmp.ge.s32.totalorder %s684_s14, 2  ;;  %s327_s7 = scalar_lea.sflag [#allocation4], %s326_s6 }
 0x14e   : > { %p480_p0 = pnand %p955_p11, %p954_p12 }
 0x150   : > { %659 = dma.done.wait (!%p480_p0), %s327_s7, 128  }
 0x151   : > { %661 = vsyncadd (!%p480_p0), %s327_s7, 4294967168  ;;  %s19_s14 = sadd.s32 1, %s684_s14   ;;  %s956_s9 = smov %s668_s10 }
 0x152   : > { %p16_p5 = scmp.ge.s32.totalorder %s19_s14, 4   ;;  %s957_s10 = smov %s672_s11 }
 0x153   : > { %s958_s11 = smov %s816_s28  ;;  %s959_s12 = smov %s680_s13 }
 0x154   : > { %s960_s13 = smov %s962_s25  ;;  %18 = sbr.rel (!%p16_p5) target bundleno = 7 (0x7), region = 77 }
 0x15b   :  { %332 = vsyncpa [#allocation3], 1 }
 0x15c   :  { %334 = vsyncpa [#allocation3 + $0x1], 1 }
 0x15d   :  { %335 = vsyncpa [#allocation6], 1 }
 0x15e   :  { %336 = vsyncpa [#allocation4], 1 }
 0x15f   :  { %338 = vsyncpa [#allocation4 + $0x1], 1 }

</bundles_post_ra>
